<compile_context>
chip_gen: v5e
topology: v5e:2x2
jax: 0.10.0
libtpu: 0.0.40
codegen_flags: <defaults>
</compile_context>

<pallas_src>
import jax
import jax.numpy as jnp
from jax.experimental import pallas as pl
from jax.experimental.pallas import tpu as pltpu

LANES = 128      # vreg lane width (fast axis)
SUBLANES = 8     # vreg sublane depth (slow axis)


def identity_kernel(x_ref, o_ref):
    # Whole-tile VMEM copy; each grid step moves one lane-dense slab.
    o_ref[...] = x_ref[...]


def archetype_dictionary_forward(x, *, max_tile_rows=1024):
    """Identity forward of ArchetypeDictionary as a lane-dense Pallas copy.

    Works for any input shape/dtype: flattens, zero-pads to a (rows, 128)
    slab whose rows are a multiple of the row-tile, streams it through a
    1-D parallel grid, then un-pads and restores the original shape.
    """
    orig_shape = x.shape
    orig_dtype = x.dtype
    flat = x.reshape(-1)
    n = flat.shape[0]

    rows_needed = pl.cdiv(n, LANES)
    # Row tile: multiple of 8 sublanes; capped so VMEM stays tiny but large
    # enough that per-grid-step overhead is negligible for big inputs.
    tile_rows = min(max_tile_rows, pl.cdiv(rows_needed, SUBLANES) * SUBLANES)
    tile_rows = max(tile_rows, SUBLANES)
    rows_padded = pl.cdiv(rows_needed, tile_rows) * tile_rows
    total = rows_padded * LANES

    flat_padded = jnp.pad(flat, (0, total - n))
    x2d = flat_padded.reshape(rows_padded, LANES)

    y2d = pl.pallas_call(
        identity_kernel,
        out_shape=jax.ShapeDtypeStruct((rows_padded, LANES), orig_dtype),
        grid=(rows_padded // tile_rows,),
        in_specs=[pl.BlockSpec((tile_rows, LANES), lambda i: (i, 0))],
        out_specs=pl.BlockSpec((tile_rows, LANES), lambda i: (i, 0)),
        compiler_params=pltpu.CompilerParams(
            dimension_semantics=("parallel",)),
    )(x2d)

    return y2d.reshape(-1)[:n].reshape(orig_shape)


def init_archetypes(key, num_archetypes, observation_count, output_count):
    # torch.randn equivalent for the module's parameter; it is not used by
    # the placeholder forward, but is constructed to mirror the module state.
    return jax.random.normal(
        key, (num_archetypes, observation_count, output_count),
        dtype=jnp.float32)


if __name__ == "__main__":
    observation_count = 16
    output_count = 4
    num_archetypes = 8
    batch = 4

    key = jax.random.PRNGKey(0)
    k_arch, k_x = jax.random.split(key)
    archetypes = init_archetypes(
        k_arch, num_archetypes, observation_count, output_count)

    # Typical input to the dictionary: per-sample subtype coefficients.
    x = jax.random.normal(k_x, (batch, num_archetypes), dtype=jnp.float32)

    out = archetype_dictionary_forward(x)
    out = jax.block_until_ready(out)

    assert out.shape == x.shape
    assert out.dtype == x.dtype
    assert jnp.array_equal(out, x), "identity forward mismatch"
    assert archetypes.shape == (num_archetypes, observation_count, output_count)

    print("KERNEL_OK")
</pallas_src>

<mosaic_0001>
module attributes {stable_mosaic.version = 11 : i64} {
  func.func @identity_kernel(%arg0: i32, %arg1: memref<8x128xf32, #tpu.memory_space<vmem>>, %arg2: memref<8x128xf32, #tpu.memory_space<vmem>>) attributes {dimension_semantics = [#tpu.dimension_semantics<parallel>], iteration_bounds = array<i64: 1>, scalar_prefetch = 0 : i64, scratch_operands = 0 : i64, tpu.core_type = #tpu.core_type<tc>, window_params = [{transform_indices = @transform_0, window_bounds = array<i64: 8, 128>}, {transform_indices = @transform_1, window_bounds = array<i64: 8, 128>}]} {
    %c0 = arith.constant 0 : index
    %c0_0 = arith.constant 0 : index
    %0 = vector.load %arg1[%c0, %c0_0] : memref<8x128xf32, #tpu.memory_space<vmem>>, vector<8x128xf32>
    %c0_1 = arith.constant 0 : index
    %c0_2 = arith.constant 0 : index
    %1 = vector.load %arg2[%c0_1, %c0_2] : memref<8x128xf32, #tpu.memory_space<vmem>>, vector<8x128xf32>
    tpu.vector_store %arg2[%c0_1, %c0_2], %0 {strides = array<i32>} : memref<8x128xf32, #tpu.memory_space<vmem>>, vector<8x128xf32>,
    return
  }
  func.func @transform_0(%arg0: i32) -> (i32, i32) {
    %c0_i32 = arith.constant 0 : i32
    %c0_i32_0 = arith.constant 0 : i32
    return %arg0, %c0_i32 : i32, i32
  }
  func.func @transform_1(%arg0: i32) -> (i32, i32) {
    %c0_i32 = arith.constant 0 : i32
    %c0_i32_0 = arith.constant 0 : i32
    return %arg0, %c0_i32 : i32, i32
  }
}

</mosaic_0001>

<bundles_post_ra>
// kernel: tpu_custom_call.1
= control target key start
LH: loop header
LB: loop body
LE: loop exit
PB: predicated region body
PF: predicated region fallthrough
CT: control target
= control target key end

     0   :  { %6 = vsyncpa [#allocation3], 0  ;;  %s114_s0 = inlined_call_operand.hbm [shape: f32[8,128], index: 0, kind: input, shape index: {}]   ;;  %s115_s1 = inlined_call_operand.hbm [shape: f32[8,128], index: 1, kind: output, shape index: {}]  }
   0x1   :  { %7 = vsyncpa [#allocation4], 0  ;;  %s13_s8 = sshll.u32 %s114_s0, 4  ;;  %s96_s9 = smov [#allocation2]   ;;  %s14_s8 = int_to_ptr.hbm [resolvable:$true] %s13_s8 }
   0x2   :  { %s15_s10 = sshll.u32 %s96_s9, 4  ;;  %s16_s10 = int_to_ptr.vmem [resolvable:$true] %s15_s10 }
   0x3   :  { %18 = dma.hbm_to_vmem [thread:$0]  %s14_s8, 128, %s16_s10, [#allocation3]  }
   0x4   :  { %92 = dma.done.wait [#allocation3], 128  }
   0x5   :  { %93 = vsyncadd [#allocation3], 4294967168  ;;  %s97_s11 = smov [#allocation5]   ;;  %s32_s15 = sshll.u32 %s115_s1, 4  ;;  %v23_v0 = vld [vmem:[#allocation2] sm:$0xff]  ;;  %s33_s15 = int_to_ptr.hbm [resolvable:$true] %s32_s15 }
   0x6   :  { %s30_s12 = sshll.u32 %s97_s11, 4  ;;  %24 = vst [vmem:[#allocation5] sm:$0xff] %v23_v0  ;;  %s31_s12 = int_to_ptr.vmem [resolvable:$true] %s30_s12 }
   0x7   :  { %35 = dma.vmem_to_hbm [thread:$0]  %s31_s12, 128, %s33_s15, [#allocation4]  }
   0x8   :  { %94 = dma.done.wait [#allocation4], 128  }
   0x9   :  { %95 = vsyncadd [#allocation4], 4294967168 }
   0xa   :  { %40 = vsyncpa [#allocation3], 1 }
   0xb   :  { %41 = vsyncpa [#allocation4], 1 }

</bundles_post_ra>
